<compile_context>
chip_gen: v7x
topology: tpu7x:2x2x1
jax: 0.10.0
libtpu: 0.0.40
codegen_flags: <defaults>
</compile_context>

<pallas_src>
import jax
import jax.numpy as jnp
from jax.experimental import pallas as pl
from jax.experimental.pallas import tpu as pltpu

BN_EPS = 1e-5
LEAKY_SLOPE = 0.2

_X_RESIDENT_MAX_BYTES = 4 * 1024 * 1024      # keep x fully VMEM-resident below this
_VMEM_TILE_BUDGET = 40 * 1024 * 1024         # working-set cap (safe for v7x 64 MiB)
_VMEM_LIMIT_BYTES = 48 * 1024 * 1024         # scoped-VMEM limit handed to Mosaic

# (B, K) x (N, K) -> (B, N): contract the in_nodes axis of both operands.
_CONTRACT_LAST = (((1,), (1,)), ((), ()))


def _bn_lrelu(y, gamma, beta):
    """Training-mode BatchNorm1d (biased batch var) + LeakyReLU(0.2), all f32."""
    mean = jnp.mean(y, axis=0, keepdims=True)
    ctr = y - mean
    var = jnp.mean(ctr * ctr, axis=0, keepdims=True)
    scale = gamma * jax.lax.rsqrt(var + BN_EPS)        # rsqrt -> EUP
    shift = beta - mean * scale
    z = y * scale + shift
    return jnp.maximum(z, LEAKY_SLOPE * z)


def _make_single_k_kernel(tn, strip):
    """Whole K reduction in one tile: no accumulator scratch, no pl.when."""
    def kernel(x_ref, w_ref, g_ref, b_ref, o_ref):
        for s0 in range(0, tn, strip):                 # static strip loop
            sl = slice(s0, s0 + strip)
            y = jax.lax.dot_general(
                x_ref[...], w_ref[sl, :],
                dimension_numbers=_CONTRACT_LAST,
                preferred_element_type=jnp.float32)
            o_ref[:, sl] = _bn_lrelu(y, g_ref[:, sl], b_ref[:, sl])
    return kernel


def _make_multi_k_kernel(tk, tn, strip, x_resident):
    """K-tiled reduction with f32 VMEM accumulator + pl.when init/finalize."""
    def kernel(x_ref, w_ref, g_ref, b_ref, o_ref, acc_ref):
        k = pl.program_id(1)

        @pl.when(k == 0)
        def _init():
            acc_ref[...] = jnp.zeros_like(acc_ref)

        if x_resident:
            start = pl.multiple_of(k * tk, tk)
            x_tile = x_ref[:, pl.ds(start, tk)]
        else:
            x_tile = x_ref[...]

        acc_ref[...] += jax.lax.dot_general(
            x_tile, w_ref[...],
            dimension_numbers=_CONTRACT_LAST,
            preferred_element_type=jnp.float32)

        @pl.when(k == pl.num_programs(1) - 1)
        def _finalize():
            for s0 in range(0, tn, strip):             # static strip loop
                sl = slice(s0, s0 + strip)
                o_ref[:, sl] = _bn_lrelu(acc_ref[:, sl], g_ref[:, sl], b_ref[:, sl])
    return kernel


def _tile_candidates(full, align=128):
    """Descending multiples of `align` dividing `full`; [full] as fallback."""
    if full % align == 0:
        return [t for t in range(full, align - 1, -align) if full % t == 0]
    return [full]


def _pick_tile(cands, pref):
    for t in cands:            # descending
        if t <= pref:
            return t
    return cands[-1]


def _next_smaller(cands, cur):
    for t in cands:
        if t < cur:
            return t
    return None


def _pick_strip(tn, pref):
    """Largest <=pref multiple-of-128 divisor of tn (else tn itself)."""
    if tn % 128 == 0:
        start = min(pref, tn)
        start -= start % 128
        for t in range(start, 127, -128):
            if tn % t == 0:
                return t
    return tn


def fc_layer_bn(x, weight, bias, gamma, beta, *,
                tile_n=1024, tile_k=1024, epilogue_strip=512,
                matmul_dtype=jnp.bfloat16):
    """x: (B, in_nodes); weight: (nodes, in_nodes); bias/gamma/beta: (nodes,)."""
    B, in_nodes = x.shape
    nodes, in_nodes_w = weight.shape
    assert in_nodes_w == in_nodes

    # Training-mode BN subtracts the per-feature batch mean of y, so a constant
    # per-feature Linear bias cancels exactly -> drop it (no add, no DMA).
    del bias

    # Low-precision matmul inputs (f32 accumulate).  No transpose of `weight`.
    if matmul_dtype is not None:
        if x.dtype != matmul_dtype:
            x = x.astype(matmul_dtype)
        if weight.dtype != matmul_dtype:
            weight = weight.astype(matmul_dtype)

    g_row = gamma.reshape(1, nodes).astype(jnp.float32)
    b_row = beta.reshape(1, nodes).astype(jnp.float32)

    x_item = jnp.dtype(x.dtype).itemsize
    w_item = jnp.dtype(weight.dtype).itemsize

    tn_cands = _tile_candidates(nodes)
    tk_cands = _tile_candidates(in_nodes)

    TN = _pick_tile(tn_cands, tile_n)
    # Megacore (v7x): keep >= 2 feature tiles so both TensorCores get work.
    if nodes // TN < 2:
        smaller = _next_smaller(tn_cands, TN)
        if smaller is not None:
            TN = smaller
    TK = _pick_tile(tk_cands, tile_k)

    x_resident = B * in_nodes * x_item <= _X_RESIDENT_MAX_BYTES

    def vmem_budget(tn, tk):
        num_k_ = in_nodes // tk
        w_b = 2 * tn * tk * w_item                               # double-buffered W
        x_b = (B * in_nodes * x_item) if (x_resident or num_k_ == 1) \
            else 2 * B * tk * x_item
        o_b = 2 * B * tn * 4                                     # double-buffered out
        a_b = B * tn * 4 if num_k_ > 1 else 0                    # f32 accumulator
        gb = 4 * tn * 4                                          # gamma/beta rows
        return w_b + x_b + o_b + a_b + gb

    # Shrink TN first, then TK, until the working set fits the v7x-safe budget.
    while vmem_budget(TN, TK) > _VMEM_TILE_BUDGET:
        nxt = _next_smaller(tn_cands, TN)
        if nxt is not None:
            TN = nxt
            continue
        nxt = _next_smaller(tk_cands, TK)
        if nxt is not None:
            TK = nxt
            continue
        break

    num_j = nodes // TN
    num_k = in_nodes // TK
    strip = _pick_strip(TN, epilogue_strip)

    cost = pl.CostEstimate(
        flops=2 * B * in_nodes * nodes,
        transcendentals=nodes,
        bytes_accessed=((1 if (x_resident or num_k == 1) else num_j) * B * in_nodes * x_item
                        + nodes * in_nodes * w_item
                        + 2 * nodes * 4
                        + B * nodes * 4),
    )
    compiler_params = pltpu.CompilerParams(
        dimension_semantics=(("parallel",) if num_k == 1
                             else ("parallel", "arbitrary")),
        vmem_limit_bytes=int(max(_VMEM_LIMIT_BYTES, vmem_budget(TN, TK) + (8 << 20))),
    )

    if num_k == 1:
        kernel = _make_single_k_kernel(TN, strip)
        grid_spec = pltpu.PrefetchScalarGridSpec(
            num_scalar_prefetch=0,
            grid=(num_j,),
            in_specs=[
                pl.BlockSpec((B, in_nodes), lambda j: (0, 0)),   # x (fetched once)
                pl.BlockSpec((TN, TK), lambda j: (j, 0)),        # W, original layout
                pl.BlockSpec((1, TN), lambda j: (0, j)),         # gamma
                pl.BlockSpec((1, TN), lambda j: (0, j)),         # beta
            ],
            out_specs=pl.BlockSpec((B, TN), lambda j: (0, j)),
            scratch_shapes=[],
        )
    else:
        kernel = _make_multi_k_kernel(TK, TN, strip, x_resident)
        if x_resident:
            x_spec = pl.BlockSpec((B, in_nodes), lambda j, k: (0, 0))  # resident
        else:
            x_spec = pl.BlockSpec((B, TK), lambda j, k: (0, k))        # streamed
        grid_spec = pltpu.PrefetchScalarGridSpec(
            num_scalar_prefetch=0,
            grid=(num_j, num_k),
            in_specs=[
                x_spec,
                pl.BlockSpec((TN, TK), lambda j, k: (j, k)),     # W, original layout
                pl.BlockSpec((1, TN), lambda j, k: (0, j)),      # gamma
                pl.BlockSpec((1, TN), lambda j, k: (0, j)),      # beta
            ],
            out_specs=pl.BlockSpec((B, TN), lambda j, k: (0, j)),
            scratch_shapes=[pltpu.VMEM((B, TN), jnp.float32)],
        )

    return pl.pallas_call(
        kernel,
        out_shape=jax.ShapeDtypeStruct((B, nodes), jnp.float32),
        grid_spec=grid_spec,
        compiler_params=compiler_params,
        cost_estimate=cost,
    )(x, weight, g_row, b_row)


def _reference(x, weight, bias, gamma, beta):
    y = jnp.dot(x, weight.T, precision=jax.lax.Precision.HIGHEST) + bias
    mean = y.mean(axis=0, keepdims=True)
    var = ((y - mean) ** 2).mean(axis=0, keepdims=True)
    z = (y - mean) / jnp.sqrt(var + BN_EPS) * gamma + beta
    return jnp.where(z > 0, z, LEAKY_SLOPE * z)


if __name__ == "__main__":
    key = jax.random.PRNGKey(0)
    k1, k2, k3, k4, k5 = jax.random.split(key, 5)

    # --- Case 1: small layer (single-K path, no accumulator) ---------------
    B, in_nodes, nodes = 8, 32, 128
    x = jax.random.normal(k1, (B, in_nodes), dtype=jnp.float32)
    bound = 1.0 / (in_nodes ** 0.5)
    weight = jax.random.uniform(k2, (nodes, in_nodes), jnp.float32, -bound, bound)
    bias = jax.random.uniform(k3, (nodes,), jnp.float32, -bound, bound)
    gamma = jnp.ones((nodes,), jnp.float32)
    beta = jnp.zeros((nodes,), jnp.float32)

    ref = _reference(x, weight, bias, gamma, beta)

    out_f32 = jax.block_until_ready(
        fc_layer_bn(x, weight, bias, gamma, beta, matmul_dtype=jnp.float32))
    assert out_f32.shape == (B, nodes)
    assert jnp.allclose(out_f32, ref, atol=1e-3, rtol=1e-3)

    out_bf16 = jax.block_until_ready(
        fc_layer_bn(x, weight, bias, gamma, beta))   # default bf16 matmul inputs
    assert out_bf16.shape == (B, nodes)
    assert jnp.allclose(out_bf16, ref, atol=5e-2, rtol=5e-2)

    # --- Case 2: exercises K-accumulator + resident-x + strip epilogue -----
    B2, in2, n2 = 16, 256, 384
    x2 = jax.random.normal(k4, (B2, in2), dtype=jnp.float32)
    bound2 = 1.0 / (in2 ** 0.5)
    w2 = jax.random.uniform(k5, (n2, in2), jnp.float32, -bound2, bound2)
    b2 = jnp.zeros((n2,), jnp.float32)
    g2 = jnp.ones((n2,), jnp.float32)
    be2 = jnp.zeros((n2,), jnp.float32)

    ref2 = _reference(x2, w2, b2, g2, be2)
    out2 = jax.block_until_ready(
        fc_layer_bn(x2, w2, b2, g2, be2, tile_n=128, tile_k=128,
                    matmul_dtype=jnp.float32))
    assert out2.shape == (B2, n2)
    assert jnp.allclose(out2, ref2, atol=1e-3, rtol=1e-3)

    print("KERNEL_OK")
</pallas_src>

<mosaic_0001>
module attributes {stable_mosaic.version = 11 : i64} {
  func.func @kernel(%arg0: i32, %arg1: memref<8x32xf32, #tpu.memory_space<vmem>>, %arg2: memref<128x32xf32, #tpu.memory_space<vmem>>, %arg3: memref<1x128xf32, #tpu.memory_space<vmem>>, %arg4: memref<1x128xf32, #tpu.memory_space<vmem>>, %arg5: memref<8x128xf32, #tpu.memory_space<vmem>>) attributes {dimension_semantics = [#tpu.dimension_semantics<parallel>], iteration_bounds = array<i64: 1>, scalar_prefetch = 0 : i64, scratch_operands = 0 : i64, tpu.core_type = #tpu.core_type<tc>, window_params = [{pipeline_mode = #tpu.pipeline_mode<synchronous>, transform_indices = @transform_0, window_bounds = array<i64: 8, 32>}, {transform_indices = @transform_1, window_bounds = array<i64: 128, 32>}, {transform_indices = @transform_2, window_bounds = array<i64: 1, 128>}, {transform_indices = @transform_3, window_bounds = array<i64: 1, 128>}, {transform_indices = @transform_4, window_bounds = array<i64: 8, 128>}]} {
    %c0 = arith.constant 0 : index
    %c0_0 = arith.constant 0 : index
    %0 = vector.load %arg1[%c0, %c0_0] : memref<8x32xf32, #tpu.memory_space<vmem>>, vector<8x32xf32>
    %c0_1 = arith.constant 0 : index
    %c0_2 = arith.constant 0 : index
    %1 = vector.load %arg2[%c0_1, %c0_2] : memref<128x32xf32, #tpu.memory_space<vmem>>, vector<128x32xf32>
    %cst = arith.constant dense<0.000000e+00> : vector<8x128xf32>
    %2 = tpu.matmul %0, %1, %cst {dimension_numbers = #tpu.dot_dimension_numbers<[1], [1], [0], [0], [0, 0, 1, 0], [], []>} : vector<8x32xf32>, vector<128x32xf32>, vector<8x128xf32> -> vector<8x128xf32>
    %c0_3 = arith.constant 0 : index
    %c0_4 = arith.constant 0 : index
    %3 = vector.load %arg3[%c0_3, %c0_4] : memref<1x128xf32, #tpu.memory_space<vmem>>, vector<1x128xf32>
    %c0_5 = arith.constant 0 : index
    %c0_6 = arith.constant 0 : index
    %4 = vector.load %arg4[%c0_5, %c0_6] : memref<1x128xf32, #tpu.memory_space<vmem>>, vector<1x128xf32>
    %cst_7 = arith.constant dense<0.000000e+00> : vector<128xf32>
    %5 = vector.multi_reduction <add>, %2, %cst_7 [0] : vector<8x128xf32> to vector<128xf32>
    %6 = vector.shape_cast %5 : vector<128xf32> to vector<1x128xf32>
    %cst_8 = arith.constant 8.000000e+00 : f32
    %7 = vector.broadcast %cst_8 : f32 to vector<1x128xf32>
    %8 = arith.divf %6, %7 : vector<1x128xf32>
    %9 = vector.broadcast %8 : vector<1x128xf32> to vector<8x128xf32>
    %10 = arith.subf %2, %9 : vector<8x128xf32>
    %11 = arith.mulf %10, %10 : vector<8x128xf32>
    %cst_9 = arith.constant dense<0.000000e+00> : vector<128xf32>
    %12 = vector.multi_reduction <add>, %11, %cst_9 [0] : vector<8x128xf32> to vector<128xf32>
    %13 = vector.shape_cast %12 : vector<128xf32> to vector<1x128xf32>
    %cst_10 = arith.constant 8.000000e+00 : f32
    %14 = vector.broadcast %cst_10 : f32 to vector<1x128xf32>
    %15 = arith.divf %13, %14 : vector<1x128xf32>
    %cst_11 = arith.constant 9.99999974E-6 : f32
    %16 = vector.broadcast %cst_11 : f32 to vector<1x128xf32>
    %17 = arith.addf %15, %16 : vector<1x128xf32>
    %18 = math.rsqrt %17 : vector<1x128xf32>
    %19 = arith.mulf %3, %18 : vector<1x128xf32>
    %20 = arith.mulf %8, %19 : vector<1x128xf32>
    %21 = arith.subf %4, %20 : vector<1x128xf32>
    %22 = vector.broadcast %19 : vector<1x128xf32> to vector<8x128xf32>
    %23 = arith.mulf %2, %22 : vector<8x128xf32>
    %24 = vector.broadcast %21 : vector<1x128xf32> to vector<8x128xf32>
    %25 = arith.addf %23, %24 : vector<8x128xf32>
    %cst_12 = arith.constant 2.000000e-01 : f32
    %26 = vector.broadcast %cst_12 : f32 to vector<8x128xf32>
    %27 = arith.mulf %26, %25 : vector<8x128xf32>
    %28 = arith.maximumf %25, %27 : vector<8x128xf32>
    %c0_13 = arith.constant 0 : index
    %c0_14 = arith.constant 0 : index
    %29 = vector.load %arg5[%c0_13, %c0_14] : memref<8x128xf32, #tpu.memory_space<vmem>>, vector<8x128xf32>
    tpu.vector_store %arg5[%c0_13, %c0_14], %28 {strides = array<i32>} : memref<8x128xf32, #tpu.memory_space<vmem>>, vector<8x128xf32>,
    return
  }
  func.func @transform_0(%arg0: i32) -> (i32, i32) {
    %c0_i32 = arith.constant 0 : i32
    %c0_i32_0 = arith.constant 0 : i32
    %c0_i32_1 = arith.constant 0 : i32
    return %c0_i32, %c0_i32_0 : i32, i32
  }
  func.func @transform_1(%arg0: i32) -> (i32, i32) {
    %c0_i32 = arith.constant 0 : i32
    %c0_i32_0 = arith.constant 0 : i32
    return %arg0, %c0_i32 : i32, i32
  }
  func.func @transform_2(%arg0: i32) -> (i32, i32) {
    %c0_i32 = arith.constant 0 : i32
    %c0_i32_0 = arith.constant 0 : i32
    return %c0_i32, %arg0 : i32, i32
  }
  func.func @transform_3(%arg0: i32) -> (i32, i32) {
    %c0_i32 = arith.constant 0 : i32
    %c0_i32_0 = arith.constant 0 : i32
    return %c0_i32, %arg0 : i32, i32
  }
  func.func @transform_4(%arg0: i32) -> (i32, i32) {
    %c0_i32 = arith.constant 0 : i32
    %c0_i32_0 = arith.constant 0 : i32
    return %c0_i32, %arg0 : i32, i32
  }
}

</mosaic_0001>

<bundles_post_ra>
// kernel: tpu_custom_call.1
= control target key start
LH: loop header
LB: loop body
LE: loop exit
PB: predicated region body
PF: predicated region fallthrough
CT: control target
= control target key end

     0   :  { %vm35_vm0 = vcmask 261120   ;;  %v343_v2 = vmov 0.0|0.0   ;;  %vm344_vm2 = vmmov 0   ;;  %v345_v5 = vmov 0.0   ;;  %s464_s0 = inlined_call_operand.vmem [shape: f32[8,32], index: 0, kind: input, shape index: {}]   ;;  %s465_s1 = inlined_call_operand.vmem [shape: f32[128,32], index: 1, kind: input, shape index: {}]   ;;  %s466_s2 = inlined_call_operand.vmem [shape: f32[1,128], index: 2, kind: input, shape index: {}]   ;;  %s467_s3 = inlined_call_operand.vmem [shape: f32[1,128], index: 3, kind: input, shape index: {}]   ;;  %s468_s4 = inlined_call_operand.hbm [shape: f32[8,128], index: 4, kind: output, shape index: {}]  }
   0x1   :  { %v19_v0 = vld [vmem:[%s465_s1] sm:$0xff]  ;;  %v20_v1 = vld [vmem:[%s465_s1 + $0x8] sm:$0xff]  ;;  %281 = vmatprep.subr.bf16.mxu0 %v343_v2  ;;  %vm380_vm1 = vmpackc.low %vm35_vm0, %vm35_vm0  ;;  %278 = vmatprep.mubr.msk.f32.mxu0 %vm344_vm2, %v345_v5 }
   0x2   :  { %v282_v3 = vpack.c.bf16 %v20_v1, %v19_v0  ;;  %v21_v6 = vld [vmem:[%s465_s1 + $0x10] sm:$0xff]  ;;  %v22_v7 = vld [vmem:[%s465_s1 + $0x18] sm:$0xff] }
   0x4   :  { %284 = vmatpush3.bf16.xpose.msk.msra.mxu0 %vm380_vm1, %v282_v3 }
   0x5   :  { %285 = vmatprep.subr.bf16.mxu0 %v343_v2 }
   0x6   :  { %9 = vsyncpa [#allocation3], 0  ;;  %v286_v8 = vpack.c.bf16 %v22_v7, %v21_v6  ;;  %v23_v9 = vld [vmem:[%s465_s1 + $0x20] sm:$0xff]  ;;  %v24_v10 = vld [vmem:[%s465_s1 + $0x28] sm:$0xff]  ;;  %v182_v47 = vlaneseq  ;;  %s346_s25 = smov [#allocation2]  }
   0x7   :  { %v290_v11 = vpack.c.bf16 %v24_v10, %v23_v9  ;;  %v25_v12 = vld [vmem:[%s465_s1 + $0x30] sm:$0xff]  ;;  %v26_v13 = vld [vmem:[%s465_s1 + $0x38] sm:$0xff]  ;;  %v27_v15 = vld [vmem:[%s465_s1 + $0x40] sm:$0xff]  ;;  %s204_s26 = sshll.u32 %s346_s25, 4  ;;  %s205_s26 = int_to_ptr.vmem [resolvable:$true] %s204_s26 }
   0x8   :  { %v294_v14 = vpack.c.bf16 %v26_v13, %v25_v12  ;;  %v28_v16 = vld [vmem:[%s465_s1 + $0x48] sm:$0xff]  ;;  %v29_v18 = vld [vmem:[%s465_s1 + $0x50] sm:$0xff]  ;;  %v30_v19 = vld [vmem:[%s465_s1 + $0x58] sm:$0xff]  ;;  %v183_v48 = vshrl.u32 %v182_v47, 7  ;;  %p324_p1 = scmp.lt.s32.totalorder %s205_s26, %s205_s26 }
   0x9   :  { %v298_v17 = vpack.c.bf16 %v28_v16, %v27_v15  ;;  %v302_v20 = vpack.c.bf16 %v30_v19, %v29_v18  ;;  %v31_v21 = vld [vmem:[%s465_s1 + $0x60] sm:$0xff]  ;;  %v32_v22 = vld [vmem:[%s465_s1 + $0x68] sm:$0xff]  ;;  %v33_v24 = vld [vmem:[%s465_s1 + $0x70] sm:$0xff] }
   0xa   :  { %v306_v23 = vpack.c.bf16 %v32_v22, %v31_v21  ;;  %v34_v25 = vld [vmem:[%s465_s1 + $0x78] sm:$0xff]  ;;  %v18_v27 = vld [vmem:[%s464_s0] sm:$0xff]  ;;  %v184_v50 = vsub.s32 0, %v183_v48 }
   0xb   :  { %v310_v26 = vpack.c.bf16 %v34_v25, %v33_v24  ;;  %v157_v49 = vld [vmem:[%s466_s2] sm:$0x1]  ;;  %s319_s2 = scalar_lea.vmem %s205_s26, 128 }
   0xc   :  { %288 = vmatpush3.bf16.xpose.msk.msra.mxu0 %vm380_vm1, %v286_v8  ;;  %v158_v53 = vld [vmem:[%s467_s3] sm:$0x1]  ;;  %p320_p0 = scmp.ne.s32.totalorder %s205_s26, %s319_s2  ;;  %p325_p2 = scmp.lt.s32.totalorder %s319_s2, %s319_s2 }
   0xd   :  { %289 = vmatprep.subr.bf16.mxu0 %v343_v2 }
   0xe   :  { %p326_p3 = por %p325_p2, %p324_p1 }
  0x10   :  { %p327_p4 = pnand %p326_p3, %p320_p0 }
  0x14   :  { %292 = vmatpush3.bf16.xpose.msk.msra.mxu0 %vm380_vm1, %v290_v11 }
  0x15   :  { %293 = vmatprep.subr.bf16.mxu0 %v343_v2 }
  0x1c   :  { %296 = vmatpush3.bf16.xpose.msk.msra.mxu0 %vm380_vm1, %v294_v14 }
  0x1d   :  { %297 = vmatprep.subr.bf16.mxu0 %v343_v2 }
  0x24   :  { %300 = vmatpush3.bf16.xpose.msk.msra.mxu0 %vm380_vm1, %v298_v17 }
  0x25   :  { %301 = vmatprep.subr.bf16.mxu0 %v343_v2 }
  0x2c   :  { %304 = vmatpush3.bf16.xpose.msk.msra.mxu0 %vm380_vm1, %v302_v20 }
  0x2d   :  { %305 = vmatprep.subr.bf16.mxu0 %v343_v2 }
  0x34   :  { %308 = vmatpush3.bf16.xpose.msk.msra.mxu0 %vm380_vm1, %v306_v23 }
  0x35   :  { %309 = vmatprep.subr.bf16.mxu0 %v343_v2 }
  0x3c   :  { %312 = vmatpush3.bf16.xpose.msk.msra.mxu0 %vm380_vm1, %v310_v26 }
  0x43   :  { %279 = vmatmul.mubr.msk.f32.vlgmr.msra.gmra.mrb[0].mxu0 %vm35_vm0, %v18_v27 }
 0x116   :  { %v153_v28 = vpop.f32.mrb[0].mxu0 }
 0x117   :  { %v159_v29 = vrot.slane %v153_v28, 4  ;;  %v280_v30 = vpop.f32.mrb[1].mxu0 }
 0x119   :  { %v160_v31 = vadd.f32 %v159_v29, %v153_v28 }
 0x11b   :  { %v161_v32 = vrot.slane %v160_v31, 2 }
 0x11d   :  { %v162_v33 = vadd.f32 %v161_v32, %v160_v31 }
 0x11f   :  { %v163_v34 = vrot.slane %v162_v33, 1 }
 0x121   :  { %v164_v35 = vadd.f32 %v163_v34, %v162_v33 }
 0x123   :  { %v166_v36 = vmul.f32 0.125, %v164_v35 }
 0x125   :  { %v167_v37 = vsub.f32 %v153_v28, %v166_v36 }
 0x127   :  { %v168_v38 = vmul.f32 %v167_v37, %v167_v37 }
 0x129   :  { %v169_v39 = vrot.slane %v168_v38, 4 }
 0x12b   :  { %v170_v40 = vadd.f32 %v169_v39, %v168_v38 }
 0x12d   :  { %v171_v41 = vrot.slane %v170_v40, 2 }
 0x12f   :  { %v172_v42 = vadd.f32 %v171_v41, %v170_v40 }
 0x131   :  { %v173_v43 = vrot.slane %v172_v42, 1 }
 0x133   :  { %v174_v44 = vadd.f32 %v173_v43, %v172_v42 }
 0x135   :  { %v175_v45 = vmul.f32 0.125, %v174_v44 }
 0x137   :  { %v176_v46 = vadd.f32 1e-05, %v175_v45 }
 0x139   :  { %317 = vrsqrt.f32 %v176_v46 }
 0x143   :  { %v318_v51 = vpop.eup %317 }
 0x144   :  { %v178_v52 = vmul.f32 %v318_v51, %v157_v49 }
 0x146   :  { %v179_v54 = vmul.f32 %v178_v52, %v166_v36  ;;  %v185_v55 = vrot.slane %v178_v52, %v184_v50 }
 0x148   :  { %v180_v56 = vsub.f32 %v158_v53, %v179_v54  ;;  %v187_v57 = vmul.f32 %v185_v55, %v153_v28 }
 0x14a   :  { %v192_v58 = vrot.slane %v180_v56, %v184_v50 }
 0x14c   :  { %v194_v59 = vadd.f32 %v192_v58, %v187_v57 }
 0x14e   :  { %v195_v60 = vmul.f32 0.2, %v194_v59 }
 0x150   :  { %v196_v61 = vmax.f32 %v194_v59, %v195_v60 }
 0x152   :  { %197 = vst [vmem:[#allocation2] sm:$0xff] %v196_v61 }
 0x153   :  { %330 = shalt.err (!%p327_p4)
}
 0x154   :  { %s331_s28 = scalar_lea.hbm %s468_s4, 128 }
 0x155   :  { %p332_p5 = scmp.ne.s32.totalorder %s468_s4, %s331_s28  ;;  %p335_p6 = scmp.lt.u32.totalorder %s331_s28, %s468_s4 }
 0x157   :  { %p337_p7 = pnand %p335_p6, %p332_p5 }
 0x159   :  { %340 = shalt.err (!%p337_p7)
}
 0x15a   :  { %207 = dma.vmem_to_hbm [thread:$0]  %s205_s26, 128, %s468_s4, [#allocation3]  }
 0x15b   :  { %341 = dma.done.wait [#allocation3], 128  }
 0x15c   :  { %342 = vsyncadd [#allocation3], 4294967168 }
 0x15d   :  { %211 = vsyncpa [#allocation3], 1 }

</bundles_post_ra>
